<compile_context>
chip_gen: v7x
topology: tpu7x:2x2x1
jax: 0.10.0
libtpu: 0.0.40
codegen_flags: <defaults>
</compile_context>

<pallas_src>
import functools

import jax
import jax.numpy as jnp
from jax.experimental import pallas as pl
from jax.experimental.pallas import tpu as pltpu


def _encoder_kernel(x_ref, w1_ref, s1_ref, t1_ref, w2_ref, s2_ref, t2_ref,
                    sel_ref, x_out_ref, p_out_ref, acc_ref, *, H, W, Cout):
    """One batch element per grid step.

    x_ref    : (1, H, W*Cin)        bf16 row-packed input (no halo; padding is
                                    folded into the banded weights / row masks)
    w1_ref   : (3, W*Cin,  W*Cout)  bf16 banded conv1 weights (one per ky)
    s1_ref/t1_ref : (1, W*Cout)     f32 folded BN1 scale / shift (bias folded in)
    w2_ref   : (3, W*Cout, W*Cout)  bf16 banded conv2 weights
    s2_ref/t2_ref : (1, W*Cout)     f32 folded BN2 scale / shift
    sel_ref  : (2, W*Cout, (W//2)*Cout)  f32 0/1 even/odd column selectors
    x_out_ref: (1, H, W*Cout)       f32 pre-pool feature map (lane dense)
    p_out_ref: (1, H//2, (W//2)*Cout) f32 2x2 max-pooled map
    acc_ref  : (H, W*Cout)          f32 VMEM accumulator scratch
    """
    f32 = jnp.float32
    WO = W * Cout

    x2 = x_ref[0]                                     # (H, W*Cin) bf16

    # ---- conv1: 3 banded MXU matmuls (ky = 1, 0, 2), f32 accumulation ------
    # ky = 1 contributes to every output row; ky = 0 / ky = 2 skip the first /
    # last output row (that is exactly the height zero-padding).
    acc_ref[...] = jnp.dot(x2, w1_ref[1], preferred_element_type=f32)
    acc_ref[1:H, :] += jnp.dot(x2[:H - 1, :], w1_ref[0],
                               preferred_element_type=f32)
    acc_ref[:H - 1, :] += jnp.dot(x2[1:, :], w1_ref[2],
                                  preferred_element_type=f32)

    # BN1 (eval, folded) + ReLU in f32; restage as bf16 for the next MXU pass.
    y1 = jnp.maximum(acc_ref[...] * s1_ref[...] + t1_ref[...], 0.0)
    y1b = y1.astype(jnp.bfloat16)                     # (H, W*Cout)

    # ---- conv2: same banded scheme -----------------------------------------
    acc_ref[...] = jnp.dot(y1b, w2_ref[1], preferred_element_type=f32)
    acc_ref[1:H, :] += jnp.dot(y1b[:H - 1, :], w2_ref[0],
                               preferred_element_type=f32)
    acc_ref[:H - 1, :] += jnp.dot(y1b[1:, :], w2_ref[2],
                                  preferred_element_type=f32)

    # BN2 (eval) + ReLU in f32
    y2 = jnp.maximum(acc_ref[...] * s2_ref[...] + t2_ref[...], 0.0)

    # lane-dense (last dim = W*Cout >= 128) unmasked store
    x_out_ref[...] = y2.reshape(1, H, WO)

    # ---- 2x2 max pool, stride 2 ---------------------------------------------
    # rows: leading-dim split (minor dim 128 untouched) + max
    yr = jnp.max(y2.reshape(H // 2, 2, WO), axis=1)   # (H//2, W*Cout)
    # columns: exact 0/1 selection matmuls pick even / odd w-groups out of the
    # packed lane axis (keeps everything f32-exact, no lane gather needed).
    p = jnp.maximum(
        jnp.dot(yr, sel_ref[0], preferred_element_type=f32),
        jnp.dot(yr, sel_ref[1], preferred_element_type=f32))
    p_out_ref[...] = p.reshape(1, H // 2, (W // 2) * Cout)


def encoder_block_forward(x_nchw, params):
    """params: dict with w1,b1,g1,be1,m1,v1,w2,b2,g2,be2,m2,v2 (PyTorch shapes)."""
    eps = 1e-5
    N, Cin, H, W = x_nchw.shape
    Cout = params["w1"].shape[0]
    assert H % 2 == 0 and W % 2 == 0

    # NCHW -> NHWC -> lane-packed (N, H, W*Cin), bf16 MXU operand.
    # No jnp.pad: the halo is handled inside the kernel (banded weights +
    # range-restricted row accumulations).
    x_rows = jnp.transpose(x_nchw, (0, 2, 3, 1)).reshape(
        N, H, W * Cin).astype(jnp.bfloat16)

    def fold_bn(b, gamma, beta, mean, var):
        # eval-mode BN folded into per-channel scale/shift (conv bias folded in),
        # tiled across the packed W*Cout lane axis. Kept in f32 (VPU path).
        s = (gamma / jnp.sqrt(var + eps)).astype(jnp.float32)
        t = ((b - mean) * s + beta).astype(jnp.float32)
        return jnp.tile(s, W)[None, :], jnp.tile(t, W)[None, :]

    def band(w_oihw):
        # (O, I, 3, 3) -> banded (3, W*I, W*O):
        #   B[ky][w'*I + i, w*O + o] = W[o, i, ky, w'-w+1]  if 0 <= w'-w+1 <= 2
        # (width zero-padding is encoded by the band's zero columns).
        O, I = w_oihw.shape[0], w_oihw.shape[1]
        taps = jnp.transpose(w_oihw, (2, 3, 1, 0)).astype(jnp.float32)  # (ky,kx,I,O)
        sel = (jnp.arange(W)[None, :, None] ==
               jnp.arange(W)[None, None, :] + jnp.arange(3)[:, None, None] - 1)
        sel = sel.astype(jnp.float32)                                    # (kx,w',w)
        B = jnp.einsum("xpw,yxio->ypiwo", sel, taps)                     # (ky,w',I,w,O)
        return B.reshape(3, W * I, W * O).astype(jnp.bfloat16)

    w1b = band(params["w1"])
    w2b = band(params["w2"])
    s1r, t1r = fold_bn(params["b1"], params["g1"], params["be1"],
                       params["m1"], params["v1"])
    s2r, t2r = fold_bn(params["b2"], params["g2"], params["be2"],
                       params["m2"], params["v2"])

    # 0/1 selection matrices that pick the even / odd w-groups of the packed
    # lane axis for the column half of the 2x2 max pool.
    lane_w = jnp.arange(W * Cout) // Cout
    lane_o = jnp.arange(W * Cout) % Cout
    out_k = jnp.arange((W // 2) * Cout) // Cout
    out_o = jnp.arange((W // 2) * Cout) % Cout
    sel_pool = jnp.stack([
        ((lane_w[:, None] == 2 * out_k[None, :] + p) &
         (lane_o[:, None] == out_o[None, :])).astype(jnp.float32)
        for p in (0, 1)])                              # (2, W*Cout, (W//2)*Cout)

    kernel = functools.partial(_encoder_kernel, H=H, W=W, Cout=Cout)

    x_out2, p_out2 = pl.pallas_call(
        kernel,
        out_shape=(
            jax.ShapeDtypeStruct((N, H, W * Cout), jnp.float32),
            jax.ShapeDtypeStruct((N, H // 2, (W // 2) * Cout), jnp.float32),
        ),
        grid_spec=pltpu.PrefetchScalarGridSpec(
            num_scalar_prefetch=0,
            grid=(N,),
            in_specs=[
                pl.BlockSpec((1, H, W * Cin), lambda n: (n, 0, 0)),
                pl.BlockSpec((3, W * Cin, W * Cout), lambda n: (0, 0, 0)),
                pl.BlockSpec((1, W * Cout), lambda n: (0, 0)),
                pl.BlockSpec((1, W * Cout), lambda n: (0, 0)),
                pl.BlockSpec((3, W * Cout, W * Cout), lambda n: (0, 0, 0)),
                pl.BlockSpec((1, W * Cout), lambda n: (0, 0)),
                pl.BlockSpec((1, W * Cout), lambda n: (0, 0)),
                pl.BlockSpec((2, W * Cout, (W // 2) * Cout),
                             lambda n: (0, 0, 0)),
            ],
            out_specs=[
                pl.BlockSpec((1, H, W * Cout), lambda n: (n, 0, 0)),
                pl.BlockSpec((1, H // 2, (W // 2) * Cout), lambda n: (n, 0, 0)),
            ],
            scratch_shapes=[pltpu.VMEM((H, W * Cout), jnp.float32)],
        ),
        compiler_params=pltpu.CompilerParams(
            # batch axis is fully independent -> shard across v7x's 2 TCs;
            # no-op on single-TC v5e/v6e.
            dimension_semantics=("parallel",),
            # raised above v5e's 16 MiB default; per-step footprint here is
            # well under 1 MiB, re-derive when adding spatial tiling.
            vmem_limit_bytes=32 * 1024 * 1024),
    )(x_rows, w1b, s1r, t1r, w2b, s2r, t2r, sel_pool)

    # back to PyTorch's NCHW convention (wrapper-side layout plumbing only)
    x_out = jnp.transpose(x_out2.reshape(N, H, W, Cout), (0, 3, 1, 2))
    p_out = jnp.transpose(p_out2.reshape(N, H // 2, W // 2, Cout), (0, 3, 1, 2))
    return x_out, p_out


# ---------------------------- pure-JAX reference ----------------------------
def _ref_forward(x, params):
    """Reference with the same bf16 operand quantization the kernel uses
    (conv inputs/weights rounded to bf16, accumulation + BN/ReLU in f32)."""
    eps = 1e-5

    def q(a):
        return a.astype(jnp.bfloat16).astype(jnp.float32)

    def conv_bn_relu(z, w, b, gamma, beta, mean, var):
        z = jax.lax.conv_general_dilated(
            q(z), q(w), window_strides=(1, 1), padding=((1, 1), (1, 1)),
            dimension_numbers=("NCHW", "OIHW", "NCHW"),
            precision=jax.lax.Precision.HIGHEST)
        z = z + b[None, :, None, None]
        z = (z - mean[None, :, None, None]) / jnp.sqrt(
            var[None, :, None, None] + eps)
        z = z * gamma[None, :, None, None] + beta[None, :, None, None]
        return jnp.maximum(z, 0.0)

    y = conv_bn_relu(x, params["w1"], params["b1"], params["g1"],
                     params["be1"], params["m1"], params["v1"])
    y = conv_bn_relu(y, params["w2"], params["b2"], params["g2"],
                     params["be2"], params["m2"], params["v2"])
    N, C, H, W = y.shape
    p = jnp.max(y.reshape(N, C, H // 2, 2, W // 2, 2), axis=(3, 5))
    return y, p


if __name__ == "__main__":
    N, Cin, Cout, H, W = 2, 4, 8, 16, 16

    key = jax.random.PRNGKey(0)
    keys = jax.random.split(key, 13)
    params = {
        "w1": jax.random.normal(keys[0], (Cout, Cin, 3, 3), jnp.float32) * 0.2,
        "b1": jax.random.normal(keys[1], (Cout,), jnp.float32) * 0.1,
        "g1": jax.random.uniform(keys[2], (Cout,), jnp.float32, 0.5, 1.5),
        "be1": jax.random.normal(keys[3], (Cout,), jnp.float32) * 0.1,
        "m1": jax.random.normal(keys[4], (Cout,), jnp.float32) * 0.1,
        "v1": jax.random.uniform(keys[5], (Cout,), jnp.float32, 0.5, 1.5),
        "w2": jax.random.normal(keys[6], (Cout, Cout, 3, 3), jnp.float32) * 0.2,
        "b2": jax.random.normal(keys[7], (Cout,), jnp.float32) * 0.1,
        "g2": jax.random.uniform(keys[8], (Cout,), jnp.float32, 0.5, 1.5),
        "be2": jax.random.normal(keys[9], (Cout,), jnp.float32) * 0.1,
        "m2": jax.random.normal(keys[10], (Cout,), jnp.float32) * 0.1,
        "v2": jax.random.uniform(keys[11], (Cout,), jnp.float32, 0.5, 1.5),
    }

    x = jax.random.normal(keys[12], (N, Cin, H, W), jnp.float32)

    y_k, p_k = encoder_block_forward(x, params)
    jax.block_until_ready(y_k)
    jax.block_until_ready(p_k)

    y_r, p_r = _ref_forward(x, params)
    # bf16 MXU operands -> compare against the bf16-quantized reference with a
    # tolerance that covers accumulation-order / rare re-rounding differences.
    assert jnp.allclose(y_k, y_r, rtol=5e-3, atol=5e-3), "feature map mismatch"
    assert jnp.allclose(p_k, p_r, rtol=5e-3, atol=5e-3), "pooled map mismatch"

    print("KERNEL_OK")
</pallas_src>

<mosaic_0001>
module attributes {stable_mosaic.version = 11 : i64} {
  func.func @_encoder_kernel(%arg0: i32, %arg1: memref<1x16x64xbf16, #tpu.memory_space<vmem>>, %arg2: memref<3x64x128xbf16, #tpu.memory_space<vmem>>, %arg3: memref<1x128xf32, #tpu.memory_space<vmem>>, %arg4: memref<1x128xf32, #tpu.memory_space<vmem>>, %arg5: memref<3x128x128xbf16, #tpu.memory_space<vmem>>, %arg6: memref<1x128xf32, #tpu.memory_space<vmem>>, %arg7: memref<1x128xf32, #tpu.memory_space<vmem>>, %arg8: memref<2x128x64xf32, #tpu.memory_space<vmem>>, %arg9: memref<1x16x128xf32, #tpu.memory_space<vmem>>, %arg10: memref<1x8x64xf32, #tpu.memory_space<vmem>>, %arg11: memref<16x128xf32, #tpu.memory_space<vmem>>) attributes {dimension_semantics = [#tpu.dimension_semantics<parallel>], iteration_bounds = array<i64: 2>, scalar_prefetch = 0 : i64, scratch_operands = 1 : i64, tpu.core_type = #tpu.core_type<tc>, window_params = [{transform_indices = @transform_0, window_bounds = array<i64: 1, 16, 64>}, {pipeline_mode = #tpu.pipeline_mode<synchronous>, transform_indices = @transform_1, window_bounds = array<i64: 3, 64, 128>}, {pipeline_mode = #tpu.pipeline_mode<synchronous>, transform_indices = @transform_2, window_bounds = array<i64: 1, 128>}, {pipeline_mode = #tpu.pipeline_mode<synchronous>, transform_indices = @transform_3, window_bounds = array<i64: 1, 128>}, {pipeline_mode = #tpu.pipeline_mode<synchronous>, transform_indices = @transform_4, window_bounds = array<i64: 3, 128, 128>}, {pipeline_mode = #tpu.pipeline_mode<synchronous>, transform_indices = @transform_5, window_bounds = array<i64: 1, 128>}, {pipeline_mode = #tpu.pipeline_mode<synchronous>, transform_indices = @transform_6, window_bounds = array<i64: 1, 128>}, {pipeline_mode = #tpu.pipeline_mode<synchronous>, transform_indices = @transform_7, window_bounds = array<i64: 2, 128, 64>}, {transform_indices = @transform_8, window_bounds = array<i64: 1, 16, 128>}, {transform_indices = @transform_9, window_bounds = array<i64: 1, 8, 64>}]} {
    %c0 = arith.constant 0 : index
    %c0_0 = arith.constant 0 : index
    %c0_1 = arith.constant 0 : index
    %0 = vector.load %arg1[%c0, %c0_0, %c0_1] : memref<1x16x64xbf16, #tpu.memory_space<vmem>>, vector<1x16x64xbf16>
    %1 = vector.shape_cast %0 : vector<1x16x64xbf16> to vector<16x64xbf16>
    %c1 = arith.constant 1 : index
    %c0_2 = arith.constant 0 : index
    %c0_3 = arith.constant 0 : index
    %2 = vector.load %arg2[%c1, %c0_2, %c0_3] : memref<3x64x128xbf16, #tpu.memory_space<vmem>>, vector<1x64x128xbf16>
    %3 = vector.shape_cast %2 : vector<1x64x128xbf16> to vector<64x128xbf16>
    %cst = arith.constant dense<0.000000e+00> : vector<16x128xf32>
    %4 = tpu.matmul %1, %3, %cst {dimension_numbers = #tpu.dot_dimension_numbers<[1], [0], [0], [1], [0, 0, 1, 1], [], []>} : vector<16x64xbf16>, vector<64x128xbf16>, vector<16x128xf32> -> vector<16x128xf32>
    %c0_4 = arith.constant 0 : index
    %c0_5 = arith.constant 0 : index
    %5 = vector.load %arg11[%c0_4, %c0_5] : memref<16x128xf32, #tpu.memory_space<vmem>>, vector<16x128xf32>
    tpu.vector_store %arg11[%c0_4, %c0_5], %4 {strides = array<i32>} : memref<16x128xf32, #tpu.memory_space<vmem>>, vector<16x128xf32>,
    %c1_6 = arith.constant 1 : index
    %c0_7 = arith.constant 0 : index
    %6 = vector.load %arg11[%c1_6, %c0_7] : memref<16x128xf32, #tpu.memory_space<vmem>>, vector<15x128xf32>
    %7 = vector.extract_strided_slice %1 {offsets = [0, 0], sizes = [15, 64], strides = [1, 1]} : vector<16x64xbf16> to vector<15x64xbf16>
    %c0_8 = arith.constant 0 : index
    %c0_9 = arith.constant 0 : index
    %c0_10 = arith.constant 0 : index
    %8 = vector.load %arg2[%c0_8, %c0_9, %c0_10] : memref<3x64x128xbf16, #tpu.memory_space<vmem>>, vector<1x64x128xbf16>
    %9 = vector.shape_cast %8 : vector<1x64x128xbf16> to vector<64x128xbf16>
    %cst_11 = arith.constant dense<0.000000e+00> : vector<15x128xf32>
    %10 = tpu.matmul %7, %9, %cst_11 {dimension_numbers = #tpu.dot_dimension_numbers<[1], [0], [0], [1], [0, 0, 1, 1], [], []>} : vector<15x64xbf16>, vector<64x128xbf16>, vector<15x128xf32> -> vector<15x128xf32>
    %11 = arith.addf %6, %10 : vector<15x128xf32>
    %c1_12 = arith.constant 1 : index
    %c0_13 = arith.constant 0 : index
    %12 = vector.load %arg11[%c1_12, %c0_13] : memref<16x128xf32, #tpu.memory_space<vmem>>, vector<15x128xf32>
    tpu.vector_store %arg11[%c1_12, %c0_13], %11 {strides = array<i32>} : memref<16x128xf32, #tpu.memory_space<vmem>>, vector<15x128xf32>,
    %c0_14 = arith.constant 0 : index
    %c0_15 = arith.constant 0 : index
    %13 = vector.load %arg11[%c0_14, %c0_15] : memref<16x128xf32, #tpu.memory_space<vmem>>, vector<15x128xf32>
    %14 = vector.extract_strided_slice %1 {offsets = [1, 0], sizes = [15, 64], strides = [1, 1]} : vector<16x64xbf16> to vector<15x64xbf16>
    %c2 = arith.constant 2 : index
    %c0_16 = arith.constant 0 : index
    %c0_17 = arith.constant 0 : index
    %15 = vector.load %arg2[%c2, %c0_16, %c0_17] : memref<3x64x128xbf16, #tpu.memory_space<vmem>>, vector<1x64x128xbf16>
    %16 = vector.shape_cast %15 : vector<1x64x128xbf16> to vector<64x128xbf16>
    %cst_18 = arith.constant dense<0.000000e+00> : vector<15x128xf32>
    %17 = tpu.matmul %14, %16, %cst_18 {dimension_numbers = #tpu.dot_dimension_numbers<[1], [0], [0], [1], [0, 0, 1, 1], [], []>} : vector<15x64xbf16>, vector<64x128xbf16>, vector<15x128xf32> -> vector<15x128xf32>
    %18 = arith.addf %13, %17 : vector<15x128xf32>
    %c0_19 = arith.constant 0 : index
    %c0_20 = arith.constant 0 : index
    %19 = vector.load %arg11[%c0_19, %c0_20] : memref<16x128xf32, #tpu.memory_space<vmem>>, vector<15x128xf32>
    tpu.vector_store %arg11[%c0_19, %c0_20], %18 {strides = array<i32>} : memref<16x128xf32, #tpu.memory_space<vmem>>, vector<15x128xf32>,
    %c0_21 = arith.constant 0 : index
    %c0_22 = arith.constant 0 : index
    %20 = vector.load %arg11[%c0_21, %c0_22] : memref<16x128xf32, #tpu.memory_space<vmem>>, vector<16x128xf32>
    %c0_23 = arith.constant 0 : index
    %c0_24 = arith.constant 0 : index
    %21 = vector.load %arg3[%c0_23, %c0_24] : memref<1x128xf32, #tpu.memory_space<vmem>>, vector<1x128xf32>
    %22 = vector.broadcast %21 : vector<1x128xf32> to vector<16x128xf32>
    %23 = arith.mulf %20, %22 : vector<16x128xf32>
    %c0_25 = arith.constant 0 : index
    %c0_26 = arith.constant 0 : index
    %24 = vector.load %arg4[%c0_25, %c0_26] : memref<1x128xf32, #tpu.memory_space<vmem>>, vector<1x128xf32>
    %25 = vector.broadcast %24 : vector<1x128xf32> to vector<16x128xf32>
    %26 = arith.addf %23, %25 : vector<16x128xf32>
    %cst_27 = arith.constant 0.000000e+00 : f32
    %27 = vector.broadcast %cst_27 : f32 to vector<16x128xf32>
    %28 = arith.maximumf %26, %27 : vector<16x128xf32>
    %29 = arith.truncf %28 : vector<16x128xf32> to vector<16x128xbf16>
    %c1_28 = arith.constant 1 : index
    %c0_29 = arith.constant 0 : index
    %c0_30 = arith.constant 0 : index
    %30 = vector.load %arg5[%c1_28, %c0_29, %c0_30] : memref<3x128x128xbf16, #tpu.memory_space<vmem>>, vector<1x128x128xbf16>
    %31 = vector.shape_cast %30 : vector<1x128x128xbf16> to vector<128x128xbf16>
    %cst_31 = arith.constant dense<0.000000e+00> : vector<16x128xf32>
    %32 = tpu.matmul %29, %31, %cst_31 {dimension_numbers = #tpu.dot_dimension_numbers<[1], [0], [0], [1], [0, 0, 1, 1], [], []>} : vector<16x128xbf16>, vector<128x128xbf16>, vector<16x128xf32> -> vector<16x128xf32>
    %c0_32 = arith.constant 0 : index
    %c0_33 = arith.constant 0 : index
    %33 = vector.load %arg11[%c0_32, %c0_33] : memref<16x128xf32, #tpu.memory_space<vmem>>, vector<16x128xf32>
    tpu.vector_store %arg11[%c0_32, %c0_33], %32 {strides = array<i32>} : memref<16x128xf32, #tpu.memory_space<vmem>>, vector<16x128xf32>,
    %c1_34 = arith.constant 1 : index
    %c0_35 = arith.constant 0 : index
    %34 = vector.load %arg11[%c1_34, %c0_35] : memref<16x128xf32, #tpu.memory_space<vmem>>, vector<15x128xf32>
    %35 = vector.extract_strided_slice %29 {offsets = [0, 0], sizes = [15, 128], strides = [1, 1]} : vector<16x128xbf16> to vector<15x128xbf16>
    %c0_36 = arith.constant 0 : index
    %c0_37 = arith.constant 0 : index
    %c0_38 = arith.constant 0 : index
    %36 = vector.load %arg5[%c0_36, %c0_37, %c0_38] : memref<3x128x128xbf16, #tpu.memory_space<vmem>>, vector<1x128x128xbf16>
    %37 = vector.shape_cast %36 : vector<1x128x128xbf16> to vector<128x128xbf16>
    %cst_39 = arith.constant dense<0.000000e+00> : vector<15x128xf32>
    %38 = tpu.matmul %35, %37, %cst_39 {dimension_numbers = #tpu.dot_dimension_numbers<[1], [0], [0], [1], [0, 0, 1, 1], [], []>} : vector<15x128xbf16>, vector<128x128xbf16>, vector<15x128xf32> -> vector<15x128xf32>
    %39 = arith.addf %34, %38 : vector<15x128xf32>
    %c1_40 = arith.constant 1 : index
    %c0_41 = arith.constant 0 : index
    %40 = vector.load %arg11[%c1_40, %c0_41] : memref<16x128xf32, #tpu.memory_space<vmem>>, vector<15x128xf32>
    tpu.vector_store %arg11[%c1_40, %c0_41], %39 {strides = array<i32>} : memref<16x128xf32, #tpu.memory_space<vmem>>, vector<15x128xf32>,
    %c0_42 = arith.constant 0 : index
    %c0_43 = arith.constant 0 : index
    %41 = vector.load %arg11[%c0_42, %c0_43] : memref<16x128xf32, #tpu.memory_space<vmem>>, vector<15x128xf32>
    %42 = vector.extract_strided_slice %29 {offsets = [1, 0], sizes = [15, 128], strides = [1, 1]} : vector<16x128xbf16> to vector<15x128xbf16>
    %c2_44 = arith.constant 2 : index
    %c0_45 = arith.constant 0 : index
    %c0_46 = arith.constant 0 : index
    %43 = vector.load %arg5[%c2_44, %c0_45, %c0_46] : memref<3x128x128xbf16, #tpu.memory_space<vmem>>, vector<1x128x128xbf16>
    %44 = vector.shape_cast %43 : vector<1x128x128xbf16> to vector<128x128xbf16>
    %cst_47 = arith.constant dense<0.000000e+00> : vector<15x128xf32>
    %45 = tpu.matmul %42, %44, %cst_47 {dimension_numbers = #tpu.dot_dimension_numbers<[1], [0], [0], [1], [0, 0, 1, 1], [], []>} : vector<15x128xbf16>, vector<128x128xbf16>, vector<15x128xf32> -> vector<15x128xf32>
    %46 = arith.addf %41, %45 : vector<15x128xf32>
    %c0_48 = arith.constant 0 : index
    %c0_49 = arith.constant 0 : index
    %47 = vector.load %arg11[%c0_48, %c0_49] : memref<16x128xf32, #tpu.memory_space<vmem>>, vector<15x128xf32>
    tpu.vector_store %arg11[%c0_48, %c0_49], %46 {strides = array<i32>} : memref<16x128xf32, #tpu.memory_space<vmem>>, vector<15x128xf32>,
    %c0_50 = arith.constant 0 : index
    %c0_51 = arith.constant 0 : index
    %48 = vector.load %arg11[%c0_50, %c0_51] : memref<16x128xf32, #tpu.memory_space<vmem>>, vector<16x128xf32>
    %c0_52 = arith.constant 0 : index
    %c0_53 = arith.constant 0 : index
    %49 = vector.load %arg6[%c0_52, %c0_53] : memref<1x128xf32, #tpu.memory_space<vmem>>, vector<1x128xf32>
    %50 = vector.broadcast %49 : vector<1x128xf32> to vector<16x128xf32>
    %51 = arith.mulf %48, %50 : vector<16x128xf32>
    %c0_54 = arith.constant 0 : index
    %c0_55 = arith.constant 0 : index
    %52 = vector.load %arg7[%c0_54, %c0_55] : memref<1x128xf32, #tpu.memory_space<vmem>>, vector<1x128xf32>
    %53 = vector.broadcast %52 : vector<1x128xf32> to vector<16x128xf32>
    %54 = arith.addf %51, %53 : vector<16x128xf32>
    %cst_56 = arith.constant 0.000000e+00 : f32
    %55 = vector.broadcast %cst_56 : f32 to vector<16x128xf32>
    %56 = arith.maximumf %54, %55 : vector<16x128xf32>
    %57 = vector.shape_cast %56 : vector<16x128xf32> to vector<1x16x128xf32>
    %c0_57 = arith.constant 0 : index
    %c0_58 = arith.constant 0 : index
    %c0_59 = arith.constant 0 : index
    %58 = vector.load %arg9[%c0_57, %c0_58, %c0_59] : memref<1x16x128xf32, #tpu.memory_space<vmem>>, vector<1x16x128xf32>
    tpu.vector_store %arg9[%c0_57, %c0_58, %c0_59], %57 {strides = array<i32>} : memref<1x16x128xf32, #tpu.memory_space<vmem>>, vector<1x16x128xf32>,
    %59 = vector.shape_cast %56 : vector<16x128xf32> to vector<8x2x128xf32>
    %cst_60 = arith.constant dense<0xFF800000> : vector<8x128xf32>
    %60 = vector.multi_reduction <maximumf>, %59, %cst_60 [1] : vector<8x2x128xf32> to vector<8x128xf32>
    %c0_61 = arith.constant 0 : index
    %c0_62 = arith.constant 0 : index
    %c0_63 = arith.constant 0 : index
    %61 = vector.load %arg8[%c0_61, %c0_62, %c0_63] : memref<2x128x64xf32, #tpu.memory_space<vmem>>, vector<1x128x64xf32>
    %62 = vector.shape_cast %61 : vector<1x128x64xf32> to vector<128x64xf32>
    %cst_64 = arith.constant dense<0.000000e+00> : vector<8x64xf32>
    %63 = tpu.matmul %60, %62, %cst_64 {dimension_numbers = #tpu.dot_dimension_numbers<[1], [0], [0], [1], [0, 0, 1, 1], [], []>} : vector<8x128xf32>, vector<128x64xf32>, vector<8x64xf32> -> vector<8x64xf32>
    %c1_65 = arith.constant 1 : index
    %c0_66 = arith.constant 0 : index
    %c0_67 = arith.constant 0 : index
    %64 = vector.load %arg8[%c1_65, %c0_66, %c0_67] : memref<2x128x64xf32, #tpu.memory_space<vmem>>, vector<1x128x64xf32>
    %65 = vector.shape_cast %64 : vector<1x128x64xf32> to vector<128x64xf32>
    %cst_68 = arith.constant dense<0.000000e+00> : vector<8x64xf32>
    %66 = tpu.matmul %60, %65, %cst_68 {dimension_numbers = #tpu.dot_dimension_numbers<[1], [0], [0], [1], [0, 0, 1, 1], [], []>} : vector<8x128xf32>, vector<128x64xf32>, vector<8x64xf32> -> vector<8x64xf32>
    %67 = arith.maximumf %63, %66 : vector<8x64xf32>
    %68 = vector.shape_cast %67 : vector<8x64xf32> to vector<1x8x64xf32>
    %c0_69 = arith.constant 0 : index
    %c0_70 = arith.constant 0 : index
    %c0_71 = arith.constant 0 : index
    %69 = vector.load %arg10[%c0_69, %c0_70, %c0_71] : memref<1x8x64xf32, #tpu.memory_space<vmem>>, vector<1x8x64xf32>
    tpu.vector_store %arg10[%c0_69, %c0_70, %c0_71], %68 {strides = array<i32>} : memref<1x8x64xf32, #tpu.memory_space<vmem>>, vector<1x8x64xf32>,
    return
  }
  func.func @transform_0(%arg0: i32) -> (i32, i32, i32) {
    %c0_i32 = arith.constant 0 : i32
    %c0_i32_0 = arith.constant 0 : i32
    %c0_i32_1 = arith.constant 0 : i32
    return %arg0, %c0_i32, %c0_i32_0 : i32, i32, i32
  }
  func.func @transform_1(%arg0: i32) -> (i32, i32, i32) {
    %c0_i32 = arith.constant 0 : i32
    %c0_i32_0 = arith.constant 0 : i32
    %c0_i32_1 = arith.constant 0 : i32
    %c0_i32_2 = arith.constant 0 : i32
    return %c0_i32, %c0_i32_0, %c0_i32_1 : i32, i32, i32
  }
  func.func @transform_2(%arg0: i32) -> (i32, i32) {
    %c0_i32 = arith.constant 0 : i32
    %c0_i32_0 = arith.constant 0 : i32
    %c0_i32_1 = arith.constant 0 : i32
    return %c0_i32, %c0_i32_0 : i32, i32
  }
  func.func @transform_3(%arg0: i32) -> (i32, i32) {
    %c0_i32 = arith.constant 0 : i32
    %c0_i32_0 = arith.constant 0 : i32
    %c0_i32_1 = arith.constant 0 : i32
    return %c0_i32, %c0_i32_0 : i32, i32
  }
  func.func @transform_4(%arg0: i32) -> (i32, i32, i32) {
    %c0_i32 = arith.constant 0 : i32
    %c0_i32_0 = arith.constant 0 : i32
    %c0_i32_1 = arith.constant 0 : i32
    %c0_i32_2 = arith.constant 0 : i32
    return %c0_i32, %c0_i32_0, %c0_i32_1 : i32, i32, i32
  }
  func.func @transform_5(%arg0: i32) -> (i32, i32) {
    %c0_i32 = arith.constant 0 : i32
    %c0_i32_0 = arith.constant 0 : i32
    %c0_i32_1 = arith.constant 0 : i32
    return %c0_i32, %c0_i32_0 : i32, i32
  }
  func.func @transform_6(%arg0: i32) -> (i32, i32) {
    %c0_i32 = arith.constant 0 : i32
    %c0_i32_0 = arith.constant 0 : i32
    %c0_i32_1 = arith.constant 0 : i32
    return %c0_i32, %c0_i32_0 : i32, i32
  }
  func.func @transform_7(%arg0: i32) -> (i32, i32, i32) {
    %c0_i32 = arith.constant 0 : i32
    %c0_i32_0 = arith.constant 0 : i32
    %c0_i32_1 = arith.constant 0 : i32
    %c0_i32_2 = arith.constant 0 : i32
    return %c0_i32, %c0_i32_0, %c0_i32_1 : i32, i32, i32
  }
  func.func @transform_8(%arg0: i32) -> (i32, i32, i32) {
    %c0_i32 = arith.constant 0 : i32
    %c0_i32_0 = arith.constant 0 : i32
    %c0_i32_1 = arith.constant 0 : i32
    return %arg0, %c0_i32, %c0_i32_0 : i32, i32, i32
  }
  func.func @transform_9(%arg0: i32) -> (i32, i32, i32) {
    %c0_i32 = arith.constant 0 : i32
    %c0_i32_0 = arith.constant 0 : i32
    %c0_i32_1 = arith.constant 0 : i32
    return %arg0, %c0_i32, %c0_i32_0 : i32, i32, i32
  }
}

</mosaic_0001>

<bundles_post_ra>
// kernel: tpu_custom_call.1
= control target key start
LH: loop header
LB: loop body
LE: loop exit
PB: predicated region body
PF: predicated region fallthrough
CT: control target
= control target key end

     0   :  { %s2503_s0 = inlined_call_operand.vmem [shape: bf16[2,16,64], index: 0, kind: input, shape index: {}]   ;;  %s2504_s1 = inlined_call_operand.vmem [shape: bf16[3,64,128], index: 1, kind: input, shape index: {}]   ;;  %s2505_s2 = inlined_call_operand.vmem [shape: f32[1,128], index: 2, kind: input, shape index: {}]   ;;  %s2506_s3 = inlined_call_operand.vmem [shape: f32[1,128], index: 3, kind: input, shape index: {}]   ;;  %s2507_s4 = inlined_call_operand.vmem [shape: bf16[3,128,128], index: 4, kind: input, shape index: {}]   ;;  %s2508_s5 = inlined_call_operand.vmem [shape: f32[1,128], index: 5, kind: input, shape index: {}]   ;;  %s2509_s6 = inlined_call_operand.vmem [shape: f32[1,128], index: 6, kind: input, shape index: {}]   ;;  %s2510_s7 = inlined_call_operand.vmem [shape: f32[2,128,64], index: 7, kind: input, shape index: {}]   ;;  %s2511_s8 = inlined_call_operand.hbm [shape: f32[2,16,128], index: 8, kind: output, shape index: {0}]   ;;  %s2512_s9 = inlined_call_operand.hbm [shape: f32[2,8,64], index: 9, kind: output, shape index: {1}]  }
   0x1   :  { %2513 = sst [smem:[#allocation9_spill]] %s2503_s0 }
   0x2   :  { %15 = vsyncpa [#allocation4], 0 }
   0x3   :  { %17 = vsyncpa [#allocation4 + $0x1], 0 }
   0x4   :  { %18 = vsyncpa [#allocation6], 0 }
   0x5   :  { %20 = vsyncpa [#allocation6 + $0x1], 0  ;;  %s2065_s30 = smov 0   ;;  %s2067_s10 = smov 0  }
   0x6   :  { %s2069_s11 = smov 0   ;;  %s2071_s12 = smov 0  }
   0x7 LB: > { %s2086_s13 = sadd.s32 4294967295, %s2005_s12   ;;  %s1409_s14 = sadd.s32 4294967294, %s2005_s12   ;;  %s2005_s12 = sphi %s2071_s12, %s2520_s12   ;;  %s2001_s11 = sphi %s2069_s11, %s2519_s11   ;;  %s1997_s10 = sphi %s2067_s10, %s2518_s10   ;;  %s1993_s30 = sphi %s2065_s30, %s2517_s30  }
   0x8   : > { %s2090_s15 = sadd.s32 1, %s2005_s12   ;;  %s206_s16 = sadd.s32 1, %s2001_s11 }
   0x9   : > { %s203_s17 = ssub.s32 %s2005_s12, %s2090_s15  ;;  %p216_p0 = scmp.ne.s32.totalorder %s2001_s11, %s1997_s10 }
   0xa   : > { %p204_p1 = scmp.eq.s32.totalorder %s203_s17, 0  ;;  %p217_p2 = scmp.eq.s32.totalorder %s2086_s13, 1 }
   0xb   : > { %p222_p3 = scmp.ne.s32.totalorder %s1997_s10, %s1993_s30  ;;  %p223_p4 = scmp.eq.s32.totalorder %s1409_s14, 1 }
   0xc   : > { %s2101_s18 = scalar_select %p204_p1, %s2001_s11, %s206_s16  }
   0xd   : > { %p2103_p5 = por %p217_p2, %p216_p0  ;;  %p2107_p6 = por %p223_p4, %p222_p3 }
   0xe   : > { %p1412_p7 = scmp.ge.s32.totalorder %s2005_s12, 1  ;;  %p296_p8 = scmp.lt.s32.totalorder %s2005_s12, 3 }
  0x10   : > { %p297_p9 = pnand %p1412_p7, %p296_p8 }
  0x11   : > { %v1874_v0 = vld [vmem:[%s2504_s1 + $0x20] sm:$0xff] (!%p297_p9)   ;;  %v2007_v1 = vmov (!%p297_p9), 0.0   ;;  %v1875_v2 = vld [vmem:[%s2504_s1 + $0x28] sm:$0xff] (!%p297_p9)   ;;  %vm2008_vm0 = vmmov (!%p297_p9), 0   ;;  %p337_p10 = scmp.lt.s32.totalorder (!%p297_p9), %s2086_s13, 1  ;;  %v1877_v5 = vld [vmem:[%s2504_s1 + $0x30] sm:$0xff] (!%p297_p9)  }
  0x12   : > { %300 = sbr.rel (%p297_p9) target bundleno = 794 (0x31a), region = 52  ;;  %1610 = vmatprep.subr.bf16.mxu0 (!%p297_p9), %v2007_v1  ;;  %1622 = vmatprep.subr.bf16.mxu1 (!%p297_p9), %v2007_v1  ;;  %v1876_v3 = vld [vmem:[%s2504_s1] sm:$0xff] (!%p297_p9)   ;;  %v1878_v4 = vld [vmem:[%s2504_s1 + $0x8] sm:$0xff] (!%p297_p9)   ;;  %s2516_s0 = sld [smem:[#allocation9_spill]] (!%p297_p9)  ;;  %v1880_v6 = vld [vmem:[%s2504_s1 + $0x10] sm:$0xff] (!%p297_p9)   ;;  %vm383_vm1 = vcmask (!%p297_p9), 523264  }
  0x13   : > { %1611 = vmatpush3.bf16.msra.mxu0 (!%p297_p9), %v1874_v0  ;;  %1618 = vmatprep.mubr.msk.bf16.mxu0 (!%p297_p9), %vm2008_vm0, %v2007_v1  ;;  %v1879_v8 = vld [vmem:[%s2504_s1 + $0x38] sm:$0xff] (!%p297_p9)   ;;  %v1882_v10 = vld [vmem:[%s2504_s1 + $0x40] sm:$0xff] (!%p297_p9)   ;;  %v1884_v14 = vld [vmem:[%s2504_s1 + $0x48] sm:$0xff] (!%p297_p9)   ;;  %s2403_s24 = sand.u32 (!%p297_p9), 1, %s1997_s10   ;;  %vm1028_vm2 = vcmask (!%p297_p9), 1041408   ;;  %vm1109_vm3 = vcmask (!%p297_p9), 1041409  }
  0x14   : > { %1612 = vmatprep.subr.bf16.mxu0 (!%p297_p9), %v2007_v1  ;;  %1630 = vmatprep.mubr.msk.bf16.mxu1 (!%p297_p9), %vm2008_vm0, %v2007_v1  ;;  %v1883_v11 = vld [vmem:[%s2504_s1 + $0x18] sm:$0xff] (!%p297_p9)   ;;  %v1885_v15 = vld [vmem:[%s2504_s1 + $0x50] sm:$0xff] (!%p297_p9)   ;;  %v1887_v18 = vld [vmem:[%s2507_s4 + $0x40] sm:$0xff] (!%p297_p9)   ;;  %s1413_s27 = sshll.u32 (!%p297_p9), %s2403_s24, 4  ;;  %vm1111_vm4 = vcmask (!%p297_p9), 1042434   ;;  %vm1113_vm5 = vcmask (!%p297_p9), 1043459  }
  0x15   : > { %1623 = vmatpush3.bf16.msra.mxu1 (!%p297_p9), %v1876_v3  ;;  %v1886_v16 = vld [vmem:[%s2504_s1 + $0x58] sm:$0xff] (!%p297_p9)   ;;  %v1888_v19 = vld [vmem:[%s2507_s4] sm:$0xff] (!%p297_p9)   ;;  %v1889_v20 = vld [vmem:[%s2507_s4 + $0x48] sm:$0xff] (!%p297_p9)   ;;  %s2409_s28 = scalar_lea.vmem (!%p297_p9), [#allocation3], %s1413_s27  ;;  %vm1115_vm6 = vcmask (!%p297_p9), 1044484   ;;  %vm1117_vm7 = vcmask (!%p297_p9), 1045509  }
  0x16   : > { %1624 = vmatprep.subr.bf16.mxu1 (!%p297_p9), %v2007_v1  ;;  %v1890_v21 = vld [vmem:[%s2507_s4 + $0x8] sm:$0xff] (!%p297_p9)   ;;  %v1891_v22 = vld [vmem:[%s2507_s4 + $0x50] sm:$0xff] (!%p297_p9)   ;;  %v1893_v24 = vld [vmem:[%s2507_s4 + $0x58] sm:$0xff] (!%p297_p9)   ;;  %vm1119_vm8 = vcmask (!%p297_p9), 1046534   ;;  %vm1121_vm9 = vcmask (!%p297_p9), 1047559   ;;  %s1302_s21 = sshll.u32 (!%p297_p9), %s2409_s28, 4  ;;  %s2428_s21 = int_to_ptr.vmem [resolvable:$true] %s1302_s21 }
  0x17   : > { %1613 = vmatpush3.bf16.msra.mxu0 (!%p297_p9), %v1875_v2  ;;  %v1892_v23 = vld [vmem:[%s2507_s4 + $0x10] sm:$0xff] (!%p297_p9)   ;;  %v1894_v25 = vld [vmem:[%s2507_s4 + $0x18] sm:$0xff] (!%p297_p9)   ;;  %v1895_v26 = vld [vmem:[%s2507_s4 + $0x60] sm:$0xff] (!%p297_p9)   ;;  %s1284_s22 = scalar_lea.sflag (!%p297_p9), [#allocation4], %s2403_s24  ;;  %s2011_s25 = smov (!%p297_p9), [#allocation3]  }
  0x18   : > { %1614 = vmatprep.subr.bf16.mxu0 (!%p297_p9), %v2007_v1  ;;  %v1896_v27 = vld [vmem:[%s2507_s4 + $0x20] sm:$0xff] (!%p297_p9)   ;;  %v1897_v28 = vld [vmem:[%s2507_s4 + $0x68] sm:$0xff] (!%p297_p9)   ;;  %v1899_v30 = vld [vmem:[%s2507_s4 + $0x70] sm:$0xff] (!%p297_p9)   ;;  %s1915_s26 = sshll.u32 (!%p297_p9), %s2011_s25, 4  ;;  %s1916_s26 = int_to_ptr.vmem [resolvable:$false] %s1915_s26 }
  0x19   : > { %s338_s29 = scalar_select %p337_p10, %s2086_s13, 1  ;;  %1625 = vmatpush3.bf16.msra.mxu1 %v1878_v4  ;;  %v1898_v29 = vld [vmem:[%s2507_s4 + $0x28] sm:$0xff]   ;;  %v1900_v31 = vld [vmem:[%s2507_s4 + $0x30] sm:$0xff]   ;;  %v1901_v32 = vld [vmem:[%s2507_s4 + $0x78] sm:$0xff]  }
  0x1a   : > { %1626 = vmatprep.subr.bf16.mxu1 %v2007_v1  ;;  %v1902_v33 = vld [vmem:[%s2507_s4 + $0x38] sm:$0xff]   ;;  %v1449_v54 = vld [vmem:[%s2505_s2] ss:$0 sm:$0xff]  ;;  %v1904_v2 = vld [vmem:[%s2507_s4 + $0x88] sm:$0xff]   ;;  %s1917_s27 = scalar_lea.vmem %s1916_s26, 512  ;;  %p1918_p0 = scmp.lt.s32.totalorder %s2428_s21, %s1916_s26 }
  0x1b   : > { %s1532_s17 = sshll.u32 %s338_s29, 3  ;;  %1615 = vmatpush3.bf16.msra.mxu0 %v1877_v5  ;;  %v1450_v56 = vld [vmem:[%s2506_s3] ss:$0 sm:$0xff]  ;;  %v1905_v3 = vld [vmem:[%s2507_s4 + $0x90] sm:$0xff]   ;;  %v1906_v4 = vld [vmem:[%s2507_s4 + $0x98] sm:$0xff]   ;;  %s1533_s29 = sshll.u32 %s2086_s13, 8 }
  0x1c   : > { %s341_s23 = scalar_lea.vmem %s2516_s0, %s1532_s17  ;;  %1616 = vmatprep.subr.bf16.mxu0 %v2007_v1  ;;  %v1903_v63 = vld [vmem:[%s2507_s4 + $0x80] sm:$0xff]   ;;  %s2425_s17 = scalar_lea.hbm %s2511_s8, %s1533_s29 }
  0x1d   : > { %v1881_v7 = vld [vmem:[%s341_s23] sm:$0xff]   ;;  %1627 = vmatpush3.bf16.msra.mxu1 %v1880_v6  ;;  %v1908_v6 = vld [vmem:[%s2507_s4 + $0xa8] sm:$0xff]   ;;  %s1911_s23 = scalar_lea.vmem %s2428_s21, 256 }
  0x1e   : > { %v522_v9 = vshll.u32 %v1881_v7, 16  ;;  %1628 = vmatprep.subr.bf16.mxu1 %v2007_v1  ;;  %v520_v12 = vshrl.u32 %v1881_v7, 16  ;;  %v1907_v5 = vld [vmem:[%s2507_s4 + $0xa0] sm:$0xff]   ;;  %p1912_p11 = scmp.ne.s32.totalorder %s2428_s21, %s1911_s23  ;;  %p1919_p1 = scmp.lt.s32.totalorder %s1917_s27, %s1911_s23 }
  0x1f   : > { %1617 = vmatpush3.bf16.msra.mxu0 %v1879_v8 }
  0x20   : > { %v524_v13 = vrot.slane %v522_v9, 1  ;;  %1634 = vmatprep.subr.bf16.mxu0 %v2007_v1  ;;  %v1910_v9 = vld [vmem:[%s2507_s4 + $0xb8] sm:$0xff]   ;;  %p1913_p12 = pnand %p1912_p11, %p2103_p5  ;;  %p1920_p2 = por %p1919_p1, %p1918_p0 }
  0x21   : > { %1629 = vmatpush3.bf16.msra.mxu1 %v1883_v11 }
  0x22   : > { %1619 = vmatmul.mubr.msk.bf16.vlgmr.msra.gmra.mrb[0].mxu0 %vm383_vm1, %v1881_v7  ;;  %1646 = vmatprep.subr.bf16.mxu1 %v2007_v1  ;;  %v525_v17 = vor.u32 %v524_v13, %v520_v12  ;;  %v1085_v13 = vld [vmem:[%s2510_s7] sm:$0xff]  ;;  %p1914_p13 = pneg %p1913_p12 }
  0x23   : > { %1635 = vmatpush3.bf16.msra.mxu0 %v1882_v10  ;;  %1642 = vmatprep.mubr.msk.bf16.mxu0 %vm2008_vm0, %v2007_v1 }
  0x24   : > { %1636 = vmatprep.subr.bf16.mxu0 %v2007_v1  ;;  %1631 = vmatmul.mubr.msk.bf16.vlgmr.msra.gmra.mrb[0].mxu1 %vm383_vm1, %v1881_v7  ;;  %v1909_v7 = vld [vmem:[%s2507_s4 + $0xb0] sm:$0xff]   ;;  %p1921_p3 = pnand %p1920_p2, %p1914_p13 }
  0x25   : > { %1662 = vmatprep.mubr.msk.bf16.mxu1 %vm2008_vm0, %v2007_v1  ;;  %1647 = vmatpush3.bf16.msra.mxu1 %v1887_v18  ;;  %v1087_v18 = vld [vmem:[%s2510_s7 + $0x10] sm:$0xff] }
  0x26   : > { %1648 = vmatprep.subr.bf16.mxu1 %v2007_v1 }
  0x27   : > { %1637 = vmatpush3.bf16.msra.mxu0 %v1884_v14  ;;  %v1086_v14 = vld [vmem:[%s2510_s7 + $0x8] sm:$0xff] }
  0x28   : > { %1638 = vmatprep.subr.bf16.mxu0 %v2007_v1 }
  0x29   : > { %1649 = vmatpush3.bf16.msra.mxu1 %v1889_v20 }
  0x2a   : > { %1650 = vmatprep.subr.bf16.mxu1 %v2007_v1 }
  0x2b   : > { %1639 = vmatpush3.bf16.msra.mxu0 %v1885_v15  ;;  %v1509_v15 = vld [vmem:[%s2510_s7 + $0x80] sm:$0xff] }
  0x2c   : > { %1640 = vmatprep.subr.bf16.mxu0 %v2007_v1 }
  0x2d   : > { %1651 = vmatpush3.bf16.msra.mxu1 %v1891_v22  ;;  %v1512_v22 = vld [vmem:[%s2510_s7 + $0x98] sm:$0xff] }
  0x2e   : > { %1652 = vmatprep.subr.bf16.mxu1 %v2007_v1 }
  0x2f   : > { %1641 = vmatpush3.bf16.msra.mxu0 %v1886_v16  ;;  %v2009_v16 = vmov 0.0|0.0  }
  0x30   : > { %1666 = vmatprep.subr.bf16.mxu0 %v2007_v1 }
  0x31   : > { %1653 = vmatpush3.bf16.msra.mxu1 %v1893_v24 }
  0x32   : > { %1643 = vmatmul.mubr.msk.bf16.vlgmr.msra.gmra.mrb[4].mxu0 %vm383_vm1, %v525_v17  ;;  %1654 = vmatprep.subr.bf16.mxu1 %v2007_v1  ;;  %v1777_v17 = vpack.c.bf16 %v1086_v14, %v1085_v13 }
  0x33   : > { %1682 = vmatprep.mubr.msk.bf16.mxu0 %vm2008_vm0, %v2007_v1  ;;  %1667 = vmatpush3.bf16.msra.mxu0 %v1888_v19  ;;  %v1088_v19 = vld [vmem:[%s2510_s7 + $0x18] sm:$0xff] }
  0x34   : > { %1668 = vmatprep.subr.bf16.mxu0 %v2007_v1 }
  0x35   : > { %1655 = vmatpush3.bf16.msra.mxu1 %v1895_v26  ;;  %v1090_v26 = vld [vmem:[%s2510_s7 + $0x28] sm:$0xff] }
  0x36   : > { %1656 = vmatprep.subr.bf16.mxu1 %v2007_v1 }
  0x37   : > { %1669 = vmatpush3.bf16.msra.mxu0 %v1890_v21  ;;  %v1511_v21 = vld [vmem:[%s2510_s7 + $0x90] sm:$0xff] }
  0x38   : > { %1670 = vmatprep.subr.bf16.mxu0 %v2007_v1  ;;  %v1804_v24 = vpack.c.bf16 %v1512_v22, %v1511_v21  ;;  %v1508_v21 = vld [vmem:[%s2509_s6] ss:$0 sm:$0xff] }
  0x39   : > { %1657 = vmatpush3.bf16.msra.mxu1 %v1897_v28  ;;  %v1514_v28 = vld [vmem:[%s2510_s7 + $0xa8] sm:$0xff] }
  0x3a   : > { %1658 = vmatprep.subr.bf16.mxu1 %v2007_v1 }
  0x3b   : > { %1671 = vmatpush3.bf16.msra.mxu0 %v1892_v23  ;;  %v1780_v23 = vpack.c.bf16 %v1088_v19, %v1087_v18 }
  0x3c   : > { %1672 = vmatprep.subr.bf16.mxu0 %v2007_v1 }
  0x3d   : > { %1659 = vmatpush3.bf16.msra.mxu1 %v1899_v30 }
  0x3e   : > { %1660 = vmatprep.subr.bf16.mxu1 %v2007_v1 }
  0x3f   : > { %1673 = vmatpush3.bf16.msra.mxu0 %v1894_v25  ;;  %v1089_v25 = vld [vmem:[%s2510_s7 + $0x20] sm:$0xff] }
  0x40   : > { %1674 = vmatprep.subr.bf16.mxu0 %v2007_v1 }
  0x41   : > { %1661 = vmatpush3.bf16.msra.mxu1 %v1901_v32  ;;  %v1092_v32 = vld [vmem:[%s2510_s7 + $0x38] sm:$0xff] }
  0x42   : > { %1686 = vmatprep.subr.bf16.mxu1 %v2007_v1 }
  0x43   : > { %1675 = vmatpush3.bf16.msra.mxu0 %v1896_v27  ;;  %v1513_v27 = vld [vmem:[%s2510_s7 + $0xa0] sm:$0xff] }
  0x44   : > { %1676 = vmatprep.subr.bf16.mxu0 %v2007_v1  ;;  %v1807_v30 = vpack.c.bf16 %v1514_v28, %v1513_v27 }
  0x47   : > { %1677 = vmatpush3.bf16.msra.mxu0 %v1898_v29  ;;  %v1783_v29 = vpack.c.bf16 %v1090_v26, %v1089_v25 }
  0x48   : > { %1678 = vmatprep.subr.bf16.mxu0 %v2007_v1 }
  0x4b   : > { %1679 = vmatpush3.bf16.msra.mxu0 %v1900_v31  ;;  %v1091_v31 = vld [vmem:[%s2510_s7 + $0x30] sm:$0xff] }
  0x4c   : > { %1680 = vmatprep.subr.bf16.mxu0 %v2007_v1 }
  0x4f   : > { %1681 = vmatpush3.bf16.msra.mxu0 %v1902_v33  ;;  %v1515_v33 = vld [vmem:[%s2510_s7 + $0xb0] sm:$0xff] }
  0x50   : > { %1776 = vmatprep.subr.bf16.mxu0 %v2009_v16 }
  0xf5   : > { %v421_v34 = vpop.f32.mrb[0].mxu0 }
  0xf6   : > { %428 = vst [vmem:[#allocation2] sm:$0xff] %v421_v34  ;;  %v1620_v35 = vpop.f32.mrb[1].mxu0  ;;  %v1516_v34 = vld [vmem:[%s2510_s7 + $0xb8] sm:$0xff] }
  0xf7   : > { %v424_v36 = vpop.f32.mrb[2].mxu0  ;;  %v498_v37 = vpop.f32.mrb[0].mxu1  ;;  %v1786_v35 = vpack.c.bf16 %v1092_v32, %v1091_v31 }
  0xf8   : > { %429 = vst [vmem:[#allocation2 + $0x8] sm:$0xff] %v424_v36  ;;  %v1621_v38 = vpop.f32.mrb[3].mxu0  ;;  %v1632_v39 = vpop.f32.mrb[1].mxu1  ;;  %v1810_v36 = vpack.c.bf16 %v1516_v34, %v1515_v33 }
  0xf9   : > { %v501_v40 = vpop.f32.mrb[2].mxu1  ;;  %v1094_v38 = vld [vmem:[%s2510_s7 + $0x48] sm:$0xff]  ;;  %v1517_v39 = vld [vmem:[%s2510_s7 + $0xc0] sm:$0xff] }
  0xfa   : > { %v1633_v41 = vpop.f32.mrb[3].mxu1 }
  0xff   : > { %v430_v42 = vld [vmem:[#allocation2 + $0x1] sm:$0xff]  ;;  %v431_v43 = vld [vmem:[#allocation2 + $0x9] sm:$0x7f] }
 0x100   : > { %v505_v44 = vadd.f32 %v498_v37, %v430_v42  ;;  %v506_v45 = vadd.f32 %v501_v40, %v431_v43  ;;  %v1093_v37 = vld [vmem:[%s2510_s7 + $0x40] sm:$0xff]  ;;  %v1518_v40 = vld [vmem:[%s2510_s7 + $0xc8] sm:$0xff]  ;;  %v1095_v43 = vld [vmem:[%s2510_s7 + $0x50] sm:$0xff] }
 0x101   : > { %v1789_v41 = vpack.c.bf16 %v1094_v38, %v1093_v37  ;;  %v1813_v42 = vpack.c.bf16 %v1518_v40, %v1517_v39 }
 0x102   : > { %507 = vst [vmem:[#allocation2 + $0x1] sm:$0xff] %v505_v44  ;;  %508 = vst [vmem:[#allocation2 + $0x9] sm:$0x7f] %v506_v45  ;;  %v1096_v44 = vld [vmem:[%s2510_s7 + $0x58] sm:$0xff]  ;;  %v1519_v45 = vld [vmem:[%s2510_s7 + $0xd0] sm:$0xff] }
 0x105   : > { %v587_v46 = vpop.f32.mrb[4].mxu0 }
 0x106   : > { %v1644_v47 = vpop.f32.mrb[5].mxu0 }
 0x107   : > { %v590_v48 = vpop.f32.mrb[6].mxu0  ;;  %v1792_v47 = vpack.c.bf16 %v1096_v44, %v1095_v43 }
 0x108   : > { %v1645_v49 = vpop.f32.mrb[7].mxu0 }
 0x109   : > { %v509_v50 = vld [vmem:[#allocation2] sm:$0xff]  ;;  %v510_v51 = vld [vmem:[#allocation2 + $0x8] sm:$0x7f] }
 0x10a   : > { %v595_v52 = vadd.f32 %v590_v48, %v510_v51  ;;  %v594_v53 = vadd.f32 %v587_v46, %v509_v50  ;;  %v1520_v46 = vld [vmem:[%s2510_s7 + $0xd8] sm:$0xff]  ;;  %v1097_v49 = vld [vmem:[%s2510_s7 + $0x60] sm:$0xff]  ;;  %v1098_v50 = vld [vmem:[%s2510_s7 + $0x68] sm:$0xff] }
 0x10b   : > { %v1816_v48 = vpack.c.bf16 %v1520_v46, %v1519_v45  ;;  %v1521_v51 = vld [vmem:[%s2510_s7 + $0xe0] sm:$0xff] }
 0x10c   : > { %597 = vst [vmem:[#allocation2 + $0x8] sm:$0x7f] %v595_v52  ;;  %v607_v55 = vmul.f32 %v1449_v54, %v594_v53  ;;  %v1522_v52 = vld [vmem:[%s2510_s7 + $0xe8] sm:$0xff]  ;;  %v1795_v53 = vpack.c.bf16 %v1098_v50, %v1097_v49 }
 0x10e   : > { %v616_v59 = vadd.f32 %v1450_v56, %v607_v55  ;;  %v1099_v55 = vld [vmem:[%s2510_s7 + $0x70] sm:$0xff] }
 0x110   : > { %v618_v61 = vmax.f32 %v616_v59, 0.0 }
 0x113   : > { %v599_v57 = vld [vmem:[#allocation2 + $0x8] sm:$0xff] }
 0x114   : > { %v608_v58 = vmul.f32 %v1449_v54, %v599_v57  ;;  %v1819_v54 = vpack.c.bf16 %v1522_v52, %v1521_v51  ;;  %v1523_v57 = vld [vmem:[%s2510_s7 + $0xf0] sm:$0xff] }
 0x116   : > { %v617_v60 = vadd.f32 %v1450_v56, %v608_v58  ;;  %v1100_v56 = vld [vmem:[%s2510_s7 + $0x78] sm:$0xff] }
 0x117   : > { %v1524_v58 = vld [vmem:[%s2510_s7 + $0xf8] sm:$0xff]  ;;  %v1798_v59 = vpack.c.bf16 %v1100_v56, %v1099_v55 }
 0x118   : > { %v619_v62 = vmax.f32 %v617_v60, 0.0  ;;  %v1822_v60 = vpack.c.bf16 %v1524_v58, %v1523_v57 }
 0x11a   : > { %v620_v0 = vpack.c.bf16 %v619_v62, %v618_v61 }
 0x11c   : > { %1663 = vmatmul.mubr.bf16.vlgmr.msra.gmra.mrb[4].mxu1 %v620_v0  ;;  %1683 = vmatmul.mubr.bf16.vlgmr.msra.gmra.mrb[8].mxu0 %v620_v0  ;;  %v862_v8 = vshll.u32 %v620_v0, 16  ;;  %v860_v11 = vshrl.u32 %v620_v0, 16 }
 0x11d   : > { %1687 = vmatpush3.bf16.msra.mxu1 %v1903_v63  ;;  %1702 = vmatprep.mubr.msk.bf16.mxu1 %vm2008_vm0, %v2007_v1 }
 0x11e   : > { %1688 = vmatprep.subr.bf16.mxu1 %v2007_v1  ;;  %1738 = vmatprep.mubr.msk.f32.mxu0 %vm2008_vm0, %v2007_v1  ;;  %v864_v10 = vrot.slane %v862_v8, 1 }
 0x11f   : > { %1778 = vmatpush3.bf16.msra.mxu0 %v1777_v17 }
 0x120   : > { %v865_v12 = vor.u32 %v864_v10, %v860_v11  ;;  %1779 = vmatprep.subr.bf16.mxu0 %v2009_v16  ;;  %v2010_v10 = vmov 1983009808  }
 0x121   : > { %1689 = vmatpush3.bf16.msra.mxu1 %v1904_v2  ;;  %v988_v11 = vunpack.c.l.s4 %v2010_v10 }
 0x122   : > { %1690 = vmatprep.subr.bf16.mxu1 %v2007_v1 }
 0x123   : > { %1781 = vmatpush3.bf16.msra.mxu0 %v1780_v23 }
 0x124   : > { %1782 = vmatprep.subr.bf16.mxu0 %v2009_v16 }
 0x125   : > { %1691 = vmatpush3.bf16.msra.mxu1 %v1905_v3 }
 0x126   : > { %1692 = vmatprep.subr.bf16.mxu1 %v2007_v1 }
 0x127   : > { %1784 = vmatpush3.bf16.msra.mxu0 %v1783_v29 }
 0x128   : > { %1785 = vmatprep.subr.bf16.mxu0 %v2009_v16 }
 0x129   : > { %1693 = vmatpush3.bf16.msra.mxu1 %v1906_v4 }
 0x12a   : > { %1694 = vmatprep.subr.bf16.mxu1 %v2007_v1 }
 0x12b   : > { %1787 = vmatpush3.bf16.msra.mxu0 %v1786_v35 }
 0x12c   : > { %1788 = vmatprep.subr.bf16.mxu0 %v2009_v16 }
 0x12d   : > { %1695 = vmatpush3.bf16.msra.mxu1 %v1907_v5 }
 0x12e   : > { %1696 = vmatprep.subr.bf16.mxu1 %v2007_v1 }
 0x12f   : > { %1790 = vmatpush3.bf16.msra.mxu0 %v1789_v41 }
 0x130   : > { %1791 = vmatprep.subr.bf16.mxu0 %v2009_v16 }
 0x131   : > { %1697 = vmatpush3.bf16.msra.mxu1 %v1908_v6 }
 0x132   : > { %1698 = vmatprep.subr.bf16.mxu1 %v2007_v1 }
 0x133   : > { %1793 = vmatpush3.bf16.msra.mxu0 %v1792_v47 }
 0x134   : > { %1794 = vmatprep.subr.bf16.mxu0 %v2009_v16 }
 0x135   : > { %1699 = vmatpush3.bf16.msra.mxu1 %v1909_v7 }
 0x136   : > { %1700 = vmatprep.subr.bf16.mxu1 %v2007_v1 }
 0x137   : > { %1796 = vmatpush3.bf16.msra.mxu0 %v1795_v53 }
 0x138   : > { %1797 = vmatprep.subr.bf16.mxu0 %v2009_v16 }
 0x139   : > { %1701 = vmatpush3.bf16.msra.mxu1 %v1910_v9 }
 0x13a   : > { %1800 = vmatprep.subr.bf16.mxu1 %v2009_v16 }
 0x13b   : > { %1799 = vmatpush3.bf16.msra.mxu0 %v1798_v59 }
 0x13c   : > { %1703 = vmatmul.mubr.bf16.vlgmr.msra.gmra.mrb[8].mxu1 %v865_v12  ;;  %v990_v12 = vlaneseq }
 0x13d   : > { %1773 = vmatprep.mubr.msk.f32.mxu1 %vm2008_vm0, %v2007_v1  ;;  %v1510_v1 = vld [vmem:[%s2510_s7 + $0x88] sm:$0xff] }
 0x13e   : > { %v1801_v20 = vpack.c.bf16 %v1510_v1, %v1509_v15  ;;  %v1507_v15 = vld [vmem:[%s2508_s5] ss:$0 sm:$0xff]  ;;  %v989_v1 = vunpack.c.0.s8 %v988_v11  ;;  %v991_v18 = vshrl.u32 %v990_v12, 7 }
 0x140   : > { %1802 = vmatpush3.bf16.msra.mxu1 %v1801_v20  ;;  %v992_v26 = vsub.s32 %v989_v1, %v991_v18 }
 0x141   : > { %1803 = vmatprep.subr.bf16.mxu1 %v2009_v16 }
 0x144   : > { %1805 = vmatpush3.bf16.msra.mxu1 %v1804_v24 }
 0x145   : > { %1806 = vmatprep.subr.bf16.mxu1 %v2009_v16 }
 0x148   : > { %1808 = vmatpush3.bf16.msra.mxu1 %v1807_v30 }
 0x149   : > { %1809 = vmatprep.subr.bf16.mxu1 %v2009_v16 }
 0x14c   : > { %1811 = vmatpush3.bf16.msra.mxu1 %v1810_v36 }
 0x14d   : > { %1812 = vmatprep.subr.bf16.mxu1 %v2009_v16 }
 0x150   : > { %1814 = vmatpush3.bf16.msra.mxu1 %v1813_v42 }
 0x151   : > { %1815 = vmatprep.subr.bf16.mxu1 %v2009_v16 }
 0x154   : > { %1817 = vmatpush3.bf16.msra.mxu1 %v1816_v48 }
 0x155   : > { %1818 = vmatprep.subr.bf16.mxu1 %v2009_v16 }
 0x158   : > { %1820 = vmatpush3.bf16.msra.mxu1 %v1819_v54 }
 0x159   : > { %1821 = vmatprep.subr.bf16.mxu1 %v2009_v16 }
 0x15c   : > { %1823 = vmatpush3.bf16.msra.mxu1 %v1822_v60 }
 0x1ef   : > { %v720_v61 = vpop.f32.mrb[4].mxu1  ;;  %v829_v62 = vpop.f32.mrb[8].mxu0 }
 0x1f0   : > { %727 = vst [vmem:[#allocation2] sm:$0xff] %v720_v61  ;;  %v1664_v63 = vpop.f32.mrb[5].mxu1  ;;  %v1684_v0 = vpop.f32.mrb[9].mxu0 }
 0x1f1   : > { %v723_v2 = vpop.f32.mrb[6].mxu1  ;;  %v832_v3 = vpop.f32.mrb[10].mxu0 }
 0x1f2   : > { %728 = vst [vmem:[#allocation2 + $0x8] sm:$0xff] %v723_v2  ;;  %v1665_v4 = vpop.f32.mrb[7].mxu1  ;;  %v1685_v5 = vpop.f32.mrb[11].mxu0 }
 0x1f9   : > { %v730_v6 = vld [vmem:[#allocation2 + $0x9] sm:$0x7f]  ;;  %v729_v7 = vld [vmem:[#allocation2 + $0x1] sm:$0xff] }
 0x1fa   : > { %v837_v8 = vadd.f32 %v832_v3, %v730_v6  ;;  %v836_v9 = vadd.f32 %v829_v62, %v729_v7 }
 0x1fc   : > { %839 = vst [vmem:[#allocation2 + $0x9] sm:$0x7f] %v837_v8  ;;  %838 = vst [vmem:[#allocation2 + $0x1] sm:$0xff] %v836_v9 }
 0x203   : > { %v840_v13 = vld [vmem:[#allocation2] sm:$0xff]  ;;  %v841_v19 = vld [vmem:[#allocation2 + $0x8] sm:$0x7f] }
 0x20f   : > { %v949_v14 = vpop.f32.mrb[8].mxu1 }
 0x210   : > { %v956_v16 = vadd.f32 %v949_v14, %v840_v13  ;;  %v1704_v17 = vpop.f32.mrb[9].mxu1 }
 0x211   : > { %v952_v20 = vpop.f32.mrb[10].mxu1 }
 0x212   : > { %958 = vst [vmem:[#allocation2] sm:$0xff] %v956_v16  ;;  %v957_v22 = vadd.f32 %v952_v20, %v841_v19  ;;  %v1705_v23 = vpop.f32.mrb[11].mxu1  ;;  %v969_v24 = vmul.f32 %v1507_v15, %v956_v16 }
 0x214   : > { %959 = vst [vmem:[#allocation2 + $0x8] sm:$0x7f] %v957_v22  ;;  %v978_v25 = vadd.f32 %v1508_v21, %v969_v24 }
 0x216   : > { %v980_v27 = vmax.f32 %v978_v25, 0.0 }
 0x218   : > { %v986_v28 = vcombine.high %v980_v27, %v980_v27  ;;  %v993_v29 = vrot.slane %v980_v27, %v992_v26  ;;  %982 = vst [vmem:[%s2409_s28] sm:$0xff] %v980_v27 }
 0x21a   : > { %v1000_v30 = vrot.slane %v986_v28, %v992_v26  ;;  %v1001_v31 = vcombine.high %v993_v29, %v993_v29  ;;  %v1029_v32 = vsel %vm1028_vm2, %v993_v29, -inf }
 0x21b   : > { %v961_v33 = vld [vmem:[#allocation2 + $0x8] sm:$0xff]  ;;  %v1030_v34 = vrot.slane %v1029_v32, 4 }
 0x21c   : > { %v970_v35 = vmul.f32 %v1507_v15, %v961_v33  ;;  %v1002_v36 = vcombine.high %v1000_v30, %v1000_v30  ;;  %v1036_v37 = vsel %vm1028_vm2, %v1001_v31, -inf  ;;  %v1043_v38 = vsel %vm1028_vm2, %v1000_v30, -inf }
 0x21d   : > { %v1031_v39 = vmax.f32 %v1029_v32, %v1030_v34  ;;  %v1037_v40 = vrot.slane %v1036_v37, 4  ;;  %v1044_v41 = vrot.slane %v1043_v38, 4 }
 0x21e   : > { %v979_v42 = vadd.f32 %v1508_v21, %v970_v35  ;;  %v1050_v43 = vsel %vm1028_vm2, %v1002_v36, -inf }
 0x21f   : > { %v1032_v44 = vrot.slane %v1031_v39, 2  ;;  %v1038_v45 = vmax.f32 %v1036_v37, %v1037_v40  ;;  %v1045_v46 = vmax.f32 %v1043_v38, %v1044_v41  ;;  %v1051_v47 = vrot.slane %v1050_v43, 4 }
 0x220   : > { %v981_v48 = vmax.f32 %v979_v42, 0.0 }
 0x221   : > { %v1033_v49 = vmax.f32 %v1031_v39, %v1032_v44  ;;  %v1039_v50 = vrot.slane %v1038_v45, 2  ;;  %v1046_v51 = vrot.slane %v1045_v46, 2  ;;  %v1052_v52 = vmax.f32 %v1050_v43, %v1051_v47 }
 0x222   : > { %v1003_v53 = vcombine.high %v981_v48, %v981_v48  ;;  %v1010_v54 = vrot.slane %v981_v48, %v992_v26  ;;  %983 = vst [vmem:[%s2409_s28 + $0x8] sm:$0xff] %v981_v48 }
 0x223   : > { %v1040_v55 = vmax.f32 %v1038_v45, %v1039_v50  ;;  %v1047_v56 = vmax.f32 %v1045_v46, %v1046_v51  ;;  %v1053_v57 = vrot.slane %v1052_v52, 2  ;;  %v1034_v61 = vrot.slane %v1033_v49, 1 }
 0x224   : > { %v1017_v58 = vrot.slane %v1003_v53, %v992_v26  ;;  %v1018_v59 = vcombine.high %v1010_v54, %v1010_v54  ;;  %v1057_v60 = vsel %vm1028_vm2, %v1010_v54, -inf }
 0x225   : > { %v1041_v62 = vrot.slane %v1040_v55, 1  ;;  %v1048_v63 = vrot.slane %v1047_v56, 1  ;;  %v1054_v0 = vmax.f32 %v1052_v52, %v1053_v57  ;;  %v1058_v3 = vrot.slane %v1057_v60, 4 }
 0x226   : > { %v1019_v2 = vcombine.high %v1017_v58, %v1017_v58  ;;  %v1064_v4 = vsel %vm1028_vm2, %v1018_v59, -inf  ;;  %v1071_v5 = vsel %vm1028_vm2, %v1017_v58, -inf  ;;  %v1035_v11 = vmax.f32 %v1033_v49, %v1034_v61 }
 0x227   : > { %v1042_v6 = vmax.f32 %v1040_v55, %v1041_v62  ;;  %v1065_v7 = vrot.slane %v1064_v4, 4  ;;  %v1059_v8 = vmax.f32 %v1057_v60, %v1058_v3  ;;  %v1072_v9 = vrot.slane %v1071_v5, 4 }
 0x228   : > { %v1078_v10 = vsel %vm1028_vm2, %v1019_v2, -inf  ;;  %v1055_v12 = vrot.slane %v1054_v0, 1  ;;  %v1049_v15 = vmax.f32 %v1047_v56, %v1048_v63 }
 0x229   : > { %v1066_v13 = vmax.f32 %v1064_v4, %v1065_v7  ;;  %v1079_v14 = vrot.slane %v1078_v10, 4  ;;  %v1060_v16 = vrot.slane %v1059_v8, 2  ;;  %v1073_v17 = vmax.f32 %v1071_v5, %v1072_v9 }
 0x22a   : > { %v1110_v19 = vsel %vm1109_vm3, %v1042_v6, %v1035_v11  ;;  %v1056_v22 = vmax.f32 %v1054_v0, %v1055_v12 }
 0x22b   : > { %v1067_v1 = vrot.slane %v1066_v13, 2  ;;  %v1080_v18 = vmax.f32 %v1078_v10, %v1079_v14  ;;  %v1061_v20 = vmax.f32 %v1059_v8, %v1060_v16  ;;  %v1074_v21 = vrot.slane %v1073_v17, 2 }
 0x22c   : > { %v1112_v27 = vsel %vm1111_vm4, %v1049_v15, %v1110_v19 }
 0x22d   : > { %v1068_v23 = vmax.f32 %v1066_v13, %v1067_v1  ;;  %v1081_v24 = vrot.slane %v1080_v18, 2  ;;  %v1062_v25 = vrot.slane %v1061_v20, 1  ;;  %v1075_v26 = vmax.f32 %v1073_v17, %v1074_v21 }
 0x22e   : > { %v1114_v34 = vsel %vm1113_vm5, %v1056_v22, %v1112_v27 }
 0x22f   : > { %v1069_v28 = vrot.slane %v1068_v23, 1  ;;  %v1082_v29 = vmax.f32 %v1080_v18, %v1081_v24  ;;  %v1063_v30 = vmax.f32 %v1061_v20, %v1062_v25  ;;  %v1076_v31 = vrot.slane %v1075_v26, 1 }
 0x231   : > { %v1070_v32 = vmax.f32 %v1068_v23, %v1069_v28  ;;  %v1083_v33 = vrot.slane %v1082_v29, 1  ;;  %v1077_v35 = vmax.f32 %v1075_v26, %v1076_v31  ;;  %v1116_v36 = vsel %vm1115_vm6, %v1063_v30, %v1114_v34 }
 0x233   : > { %v1084_v37 = vmax.f32 %v1082_v29, %v1083_v33  ;;  %v1118_v38 = vsel %vm1117_vm7, %v1070_v32, %v1116_v36 }
 0x234   : > { %v1120_v39 = vsel %vm1119_vm8, %v1077_v35, %v1118_v38 }
 0x235   : > { %v1122_v40 = vsel %vm1121_vm9, %v1084_v37, %v1120_v39 }
 0x236   : > { %1739 = vmatmul.mubr.f32.vlgmr.msra.gmra.mrb[12].mxu0 %v1122_v40  ;;  %1774 = vmatmul.mubr.f32.vlgmr.msra.gmra.mrb[12].mxu1 %v1122_v40 }
 0x237   : > { %1924 = shalt.err (!%p1921_p3)
}
 0x238   : > { %s1925_s28 = scalar_lea.hbm %s2425_s17, 256  ;;  %s1929_s16 = scalar_lea.hbm %s2511_s8, 512 }
 0x239   : > { %p1926_p4 = scmp.ne.s32.totalorder %s2425_s17, %s1925_s28  ;;  %p1930_p9 = scmp.lt.u32.totalorder %s2425_s17, %s2511_s8 }
 0x23a   : > { %p1931_p10 = scmp.lt.u32.totalorder %s1929_s16, %s1925_s28  ;;  %p1933_p12 = scmp.lt.u32.totalorder %s1925_s28, %s2425_s17 }
 0x23b   : > { %p1927_p7 = pnand %p1926_p4, %p2103_p5 }
 0x23c   : > { %p1932_p11 = por %p1931_p10, %p1930_p9 }
 0x23d   : > { %p1928_p8 = pneg %p1927_p7 }
 0x23e   : > { %p1934_p13 = por %p1933_p12, %p1932_p11 }
 0x240   : > { %p1935_p0 = pnand %p1934_p13, %p1928_p8 }
 0x242   : > { %1938 = shalt.err (!%p1935_p0)
}
 0x243   : > { %s2012_s23 = smov 128   ;;  %s2013_s27 = smov 8  }
 0x244   : > { %1824 = dma.vmem_to_hbm [thread:$0]  (%p2103_p5), %s2428_s21, 256, %s2425_s17, %s1284_s22, %s2012_s23, %s2012_s23, %s2013_s27  }
 0x245   : > { %s1414_s29 = sshll.u32 %s2403_s24, 3  ;;  %s1529_s14 = sshll.u32 %s2086_s13, 7 }
 0x246   : > { %s336_s16 = scalar_lea.vmem [#allocation5], %s1414_s29  ;;  %s2459_s0 = scalar_lea.hbm %s2512_s9, %s1529_s14 }
 0x247   : > { %s1318_s28 = sshll.u32 %s336_s16, 4  ;;  %s1289_s13 = scalar_lea.sflag [#allocation6], %s2403_s24  ;;  %s2461_s28 = int_to_ptr.vmem [resolvable:$true] %s1318_s28 }
 0x248   : > { %s1939_s17 = scalar_lea.vmem %s2461_s28, 128  ;;  %s2014_s21 = smov [#allocation5]  }
 0x249   : > { %p1940_p1 = scmp.ne.s32.totalorder %s2461_s28, %s1939_s17  ;;  %s1943_s22 = sshll.u32 %s2014_s21, 4  ;;  %s1944_s22 = int_to_ptr.vmem [resolvable:$false] %s1943_s22 }
 0x24a   : > { %s1945_s23 = scalar_lea.vmem %s1944_s22, 256  ;;  %p1946_p4 = scmp.lt.s32.totalorder %s2461_s28, %s1944_s22 }
 0x24b   : > { %p1941_p2 = pnand %p1940_p1, %p2103_p5  ;;  %p1947_p7 = scmp.lt.s32.totalorder %s1945_s23, %s1939_s17 }
 0x24d   : > { %p1942_p3 = pneg %p1941_p2  ;;  %p1948_p8 = por %p1947_p7, %p1946_p4 }
 0x24f   : > { %p1949_p9 = pnand %p1948_p8, %p1942_p3 }
 0x309   : > { %v1190_v41 = vpop.f32.mrb[12].mxu0  ;;  %v1277_v42 = vpop.f32.mrb[12].mxu1 }
 0x30a   : > { %v1281_v43 = vmax.f32 %v1190_v41, %v1277_v42  ;;  %v1740_v44 = vpop.f32.mrb[13].mxu0  ;;  %v1775_v45 = vpop.f32.mrb[13].mxu1 }
 0x30c   : > { %1282 = vst.msk [vmem:[%s336_s16] sm:$0xff] %vm383_vm1, %v1281_v43 }
 0x30d   : > { %1952 = shalt.err (!%p1949_p9)
}
 0x30e   : > { %s1953_s24 = scalar_lea.hbm %s2459_s0, 128  ;;  %s1957_s14 = scalar_lea.hbm %s2512_s9, 256 }
 0x30f   : > { %p1954_p10 = scmp.ne.s32.totalorder %s2459_s0, %s1953_s24  ;;  %p1958_p13 = scmp.lt.u32.totalorder %s2459_s0, %s2512_s9 }
 0x310   : > { %p1959_p0 = scmp.lt.u32.totalorder %s1957_s14, %s1953_s24  ;;  %p1961_p2 = scmp.lt.u32.totalorder %s1953_s24, %s2459_s0 }
 0x311   : > { %p1955_p11 = pnand %p1954_p10, %p2103_p5 }
 0x312   : > { %p1960_p1 = por %p1959_p0, %p1958_p13 }
 0x313   : > { %p1956_p12 = pneg %p1955_p11 }
 0x314   : > { %p1962_p3 = por %p1961_p2, %p1960_p1 }
 0x316   : > { %p1963_p4 = pnand %p1962_p3, %p1956_p12 }
 0x318   : > { %1966 = shalt.err (!%p1963_p4)
}
 0x319   : > { %1825 = dma.vmem_to_hbm [thread:$0]  (%p2103_p5), %s2461_s28, 128, %s2459_s0, %s1289_s13  }
 0x31a PF: > { %p1835_p7 = scmp.ge.s32.totalorder %s2005_s12, 2  ;;  %s1330_s26 = sand.u32 1, %s1993_s30  }
 0x31b   : > { %s1331_s17 = scalar_lea.sflag [#allocation4], %s1330_s26 }
 0x31c   : > { %p1829_p8 = pnand %p1835_p7, %p2107_p6 }
 0x31e   : > { %1984 = dma.done.wait (!%p1829_p8), %s1331_s17, 256  }
 0x31f   : > { %1986 = vsyncadd (!%p1829_p8), %s1331_s17, 4294967040  ;;  %s1340_s21 = scalar_lea.sflag [#allocation6], %s1330_s26 }
 0x320   : > { %1988 = dma.done.wait (!%p1829_p8), %s1340_s21, 128  }
 0x321   : > { %1990 = vsyncadd (!%p1829_p8), %s1340_s21, 4294967168  ;;  %p23_p5 = scmp.ge.s32.totalorder %s2090_s15, 4   ;;  %s2517_s30 = smov %s1997_s10 }
 0x322   : > { %s2518_s10 = smov %s2001_s11  ;;  %s2519_s11 = smov %s2101_s18 }
 0x323   : > { %s2520_s12 = smov %s2090_s15  ;;  %25 = sbr.rel (!%p23_p5) target bundleno = 7 (0x7), region = 109 }
 0x32a   :  { %1345 = vsyncpa [#allocation4], 1 }
 0x32b   :  { %1347 = vsyncpa [#allocation4 + $0x1], 1 }
 0x32c   :  { %1348 = vsyncpa [#allocation6], 1 }
 0x32d   :  { %1350 = vsyncpa [#allocation6 + $0x1], 1 }

</bundles_post_ra>
